<compile_context>
chip_gen: v5e
topology: v5e:2x2
jax: 0.10.0
libtpu: 0.0.40
codegen_flags: <defaults>
</compile_context>

<pallas_src>
import functools

import jax
import jax.numpy as jnp
from jax.experimental import pallas as pl
from jax.experimental.pallas import tpu as pltpu

LANE = 128                      # lane tile (last dim)
SUBLANE = 8                     # f32 sublane tile (second-to-last dim)
WEIGHT_DTYPE = jnp.bfloat16     # MXU-native operand dtype on v6e/v7x


def _round_up(n, m):
    return ((n + m - 1) // m) * m


def rnn_kernel(x0_ref, w_hh0_ref, w_cat_ref, b_ref, w_fc_ref, b_fc_ref,
               out_ref, h_scratch, *, num_layers):
    """One (batch_tile, timestep) grid step of the stacked ReLU RNN.

    x0_ref   : (1, Bt, Hp)            bf16  precomputed x_t @ W_ih0 + b0 (streamed)
    w_hh0_ref: (Hp, Hp)               bf16  layer-0 hidden->hidden weight (transposed)
    w_cat_ref: (max(L-1,1), 2Hp, Hp)  bf16  fused [W_ih_l ; W_hh_l] (transposed)
    b_ref    : (max(L-1,1), 1, Hp)    f32   combined bias per upper layer
    w_fc_ref : (Hp, Op)               bf16  final linear weight (transposed)
    b_fc_ref : (1, Op)                f32   final linear bias
    out_ref  : (Bt, Op)               f32   written only at the last timestep
    h_scratch: (L, Bt, Hp)            f32   per-layer hidden state (persists over grid)
    """
    t = pl.program_id(1)

    @pl.when(t == 0)
    def _init():
        h_scratch[...] = jnp.zeros_like(h_scratch)

    # ---- layer 0: input projection hoisted; only the recurrent matmul here ----
    h_prev0 = h_scratch[0]                                        # (Bt, Hp) f32
    pre0 = (x0_ref[0].astype(jnp.float32)
            + jnp.dot(h_prev0.astype(WEIGHT_DTYPE), w_hh0_ref[...],
                      preferred_element_type=jnp.float32))
    h_below = jnp.maximum(pre0, 0.0)
    h_scratch[0] = h_below

    # ---- layers 1..L-1: statically unrolled, one fused matmul per layer ----
    for l in range(1, num_layers):
        h_prev = h_scratch[l]                                     # (Bt, Hp) f32
        cat = jnp.concatenate([h_below.astype(WEIGHT_DTYPE),
                               h_prev.astype(WEIGHT_DTYPE)], axis=-1)
        pre = (jnp.dot(cat, w_cat_ref[l - 1],
                       preferred_element_type=jnp.float32)
               + b_ref[l - 1])
        h_below = jnp.maximum(pre, 0.0)
        h_scratch[l] = h_below

    # ---- fc(out[:, -1, :]) == fc(last hidden of top layer) ----
    @pl.when(t == pl.num_programs(1) - 1)
    def _finalize():
        out_ref[...] = (jnp.dot(h_below.astype(WEIGHT_DTYPE), w_fc_ref[...],
                                preferred_element_type=jnp.float32)
                        + b_fc_ref[...])


def rnn_model_forward(x, params, *, num_layers, output_dim):
    """x: (B, T, D) batch-first, like the PyTorch module. Returns (B, O) f32."""
    B, T, D = x.shape
    Dp, Hp = params["w_ih0"].shape
    Op = params["w_fc"].shape[-1]

    b_tile = SUBLANE
    Bp = _round_up(B, b_tile)
    nb = Bp // b_tile

    # Pad batch / feature dims to full vreg tiles (pad region stays zero), go
    # time-major so the streamed time index is the leading (blocked) axis.
    x_pad = jnp.zeros((Bp, T, Dp), jnp.float32).at[:B, :, :D].set(
        x.astype(jnp.float32))
    x_tm = jnp.transpose(x_pad, (1, 0, 2))                        # (T, Bp, Dp)

    # Hoisted layer-0 input projection: one big, MXU-efficient matmul over all
    # timesteps, outside the serial recurrence; streamed into the kernel.
    x0 = (jnp.einsum("tbd,dh->tbh", x_tm, params["w_ih0"],
                     preferred_element_type=jnp.float32)
          + params["b0"]).astype(WEIGHT_DTYPE)                    # (T, Bp, Hp)

    kernel = functools.partial(rnn_kernel, num_layers=num_layers)

    out_pad = pl.pallas_call(
        kernel,
        out_shape=jax.ShapeDtypeStruct((Bp, Op), jnp.float32),
        grid_spec=pltpu.PrefetchScalarGridSpec(
            num_scalar_prefetch=0,
            grid=(nb, T),                                         # serial time axis last
            in_specs=[
                pl.BlockSpec((1, b_tile, Hp), lambda b, t: (t, b, 0)),      # x0 (streamed)
                pl.BlockSpec((Hp, Hp), lambda b, t: (0, 0)),                # w_hh0
                pl.BlockSpec(params["w_cat"].shape, lambda b, t: (0, 0, 0)),
                pl.BlockSpec(params["b"].shape, lambda b, t: (0, 0, 0)),
                pl.BlockSpec((Hp, Op), lambda b, t: (0, 0)),                # w_fc
                pl.BlockSpec((1, Op), lambda b, t: (0, 0)),                 # b_fc
            ],
            out_specs=pl.BlockSpec((b_tile, Op), lambda b, t: (b, 0)),
            scratch_shapes=[pltpu.VMEM((num_layers, b_tile, Hp), jnp.float32)],
        ),
        compiler_params=pltpu.CompilerParams(
            dimension_semantics=("parallel", "arbitrary"),
            vmem_limit_bytes=32 * 1024 * 1024,
        ),
    )(x0, params["w_hh0"], params["w_cat"], params["b"],
      params["w_fc"], params["b_fc"])

    return out_pad[:B, :output_dim]


def init_params(key, input_dim, hidden_dim, num_layers, output_dim):
    """Synthetic init mirroring nn.RNN / nn.Linear, packed + padded for the kernel.

    PyTorch shapes: weight_ih_l0 (H, D), weight_ih_l>0 (H, H), weight_hh_l (H, H),
    bias_ih_l / bias_hh_l (H,); fc.weight (O, H), fc.bias (O,).
    """
    k = 1.0 / jnp.sqrt(hidden_dim)
    keys = jax.random.split(key, 4 * num_layers + 2)
    it = iter(keys)

    W_ih, W_hh, b_ih, b_hh = [], [], [], []
    for l in range(num_layers):
        in_dim = input_dim if l == 0 else hidden_dim
        W_ih.append(jax.random.uniform(next(it), (hidden_dim, in_dim), jnp.float32, -k, k))
        W_hh.append(jax.random.uniform(next(it), (hidden_dim, hidden_dim), jnp.float32, -k, k))
        b_ih.append(jax.random.uniform(next(it), (hidden_dim,), jnp.float32, -k, k))
        b_hh.append(jax.random.uniform(next(it), (hidden_dim,), jnp.float32, -k, k))
    W_fc = jax.random.uniform(next(it), (output_dim, hidden_dim), jnp.float32, -k, k)
    b_fc = jax.random.uniform(next(it), (output_dim,), jnp.float32, -k, k)

    H, D, O, L = hidden_dim, input_dim, output_dim, num_layers
    Hp, Dp, Op = _round_up(H, LANE), _round_up(D, LANE), _round_up(O, LANE)
    Lm1 = max(L - 1, 1)

    # Layer 0: input projection hoisted to the wrapper (kept f32 there); bias folded in.
    w_ih0 = jnp.zeros((Dp, Hp), jnp.float32).at[:D, :H].set(W_ih[0].T)
    b0 = jnp.zeros((Hp,), jnp.float32).at[:H].set(b_ih[0] + b_hh[0])
    w_hh0 = jnp.zeros((Hp, Hp), jnp.float32).at[:H, :H].set(W_hh[0].T)

    # Upper layers: fused [W_ih_l ; W_hh_l] -> single (2*Hp, Hp) matmul per layer.
    w_cat = jnp.zeros((Lm1, 2 * Hp, Hp), jnp.float32)
    b_up = jnp.zeros((Lm1, 1, Hp), jnp.float32)
    for l in range(1, L):
        w_cat = w_cat.at[l - 1, :H, :H].set(W_ih[l].T)
        w_cat = w_cat.at[l - 1, Hp:Hp + H, :H].set(W_hh[l].T)
        b_up = b_up.at[l - 1, 0, :H].set(b_ih[l] + b_hh[l])

    w_fc_p = jnp.zeros((Hp, Op), jnp.float32).at[:H, :O].set(W_fc.T)
    b_fc_p = jnp.zeros((1, Op), jnp.float32).at[0, :O].set(b_fc)

    params = {
        "w_ih0": w_ih0,                          # (Dp, Hp)        f32 (wrapper matmul)
        "b0": b0,                                # (Hp,)           f32
        "w_hh0": w_hh0.astype(WEIGHT_DTYPE),     # (Hp, Hp)        bf16
        "w_cat": w_cat.astype(WEIGHT_DTYPE),     # (Lm1, 2Hp, Hp)  bf16
        "b": b_up,                               # (Lm1, 1, Hp)    f32
        "w_fc": w_fc_p.astype(WEIGHT_DTYPE),     # (Hp, Op)        bf16
        "b_fc": b_fc_p,                          # (1, Op)         f32
    }
    raw = (W_ih, W_hh, b_ih, b_hh, W_fc, b_fc)
    return params, raw


def rnn_model_reference(x, raw):
    """Pure-JAX f32 reference matching PyTorch nn.RNN(relu) + Linear semantics."""
    W_ih, W_hh, b_ih, b_hh, W_fc, b_fc = raw
    B, T, _ = x.shape
    L = len(W_ih)
    H = W_hh[0].shape[0]
    h = [jnp.zeros((B, H), jnp.float32) for _ in range(L)]
    for t in range(T):
        inp = x[:, t, :]
        for l in range(L):
            pre = inp @ W_ih[l].T + b_ih[l] + h[l] @ W_hh[l].T + b_hh[l]
            h[l] = jnp.maximum(pre, 0.0)
            inp = h[l]
    return h[-1] @ W_fc.T + b_fc


if __name__ == "__main__":
    # Small shapes consistent with the module's forward.
    B, T = 2, 8
    input_dim, hidden_dim, num_layers, output_dim = 8, 32, 2, 4

    key = jax.random.PRNGKey(0)
    kx, kp = jax.random.split(key)
    x = jax.random.normal(kx, (B, T, input_dim), jnp.float32)

    params, raw = init_params(kp, input_dim, hidden_dim, num_layers, output_dim)

    out = rnn_model_forward(x, params, num_layers=num_layers, output_dim=output_dim)
    out = jax.block_until_ready(out)

    ref = rnn_model_reference(x, raw)
    assert out.shape == (B, output_dim), out.shape
    # bf16 MXU operands (f32 accumulation) => loosened tolerance vs the f32 reference.
    assert jnp.allclose(out, ref, rtol=5e-2, atol=5e-2), (out, ref)

    print("KERNEL_OK")
</pallas_src>

<mosaic_0001>
module attributes {stable_mosaic.version = 11 : i64} {
  func.func @rnn_kernel(%arg0: i32, %arg1: i32, %arg2: memref<1x8x128xbf16, #tpu.memory_space<vmem>>, %arg3: memref<128x128xbf16, #tpu.memory_space<vmem>>, %arg4: memref<1x256x128xbf16, #tpu.memory_space<vmem>>, %arg5: memref<1x1x128xf32, #tpu.memory_space<vmem>>, %arg6: memref<128x128xbf16, #tpu.memory_space<vmem>>, %arg7: memref<1x128xf32, #tpu.memory_space<vmem>>, %arg8: memref<8x128xf32, #tpu.memory_space<vmem>>, %arg9: memref<2x8x128xf32, #tpu.memory_space<vmem>>) attributes {dimension_semantics = [#tpu.dimension_semantics<parallel>, #tpu.dimension_semantics<arbitrary>], iteration_bounds = array<i64: 1, 8>, scalar_prefetch = 0 : i64, scratch_operands = 1 : i64, tpu.core_type = #tpu.core_type<tc>, window_params = [{transform_indices = @transform_0, window_bounds = array<i64: 1, 8, 128>}, {pipeline_mode = #tpu.pipeline_mode<synchronous>, transform_indices = @transform_1, window_bounds = array<i64: 128, 128>}, {pipeline_mode = #tpu.pipeline_mode<synchronous>, transform_indices = @transform_2, window_bounds = array<i64: 1, 256, 128>}, {pipeline_mode = #tpu.pipeline_mode<synchronous>, transform_indices = @transform_3, window_bounds = array<i64: 1, 1, 128>}, {pipeline_mode = #tpu.pipeline_mode<synchronous>, transform_indices = @transform_4, window_bounds = array<i64: 128, 128>}, {pipeline_mode = #tpu.pipeline_mode<synchronous>, transform_indices = @transform_5, window_bounds = array<i64: 1, 128>}, {transform_indices = @transform_6, window_bounds = array<i64: 8, 128>}]} {
    %c0_i32 = arith.constant 0 : i32
    %0 = arith.cmpi eq, %arg1, %c0_i32 : i32
    %1 = arith.extui %0 : i1 to i32
    %c0_i32_0 = arith.constant 0 : i32
    %2 = arith.cmpi ne, %1, %c0_i32_0 : i32
    scf.if %2 {
      %cst_26 = arith.constant 0.000000e+00 : f32
      %37 = vector.broadcast %cst_26 : f32 to vector<2x8x128xf32>
      %c0_27 = arith.constant 0 : index
      %c0_28 = arith.constant 0 : index
      %c0_29 = arith.constant 0 : index
      %38 = vector.load %arg9[%c0_27, %c0_28, %c0_29] : memref<2x8x128xf32, #tpu.memory_space<vmem>>, vector<2x8x128xf32>
      tpu.vector_store %arg9[%c0_27, %c0_28, %c0_29], %37 {strides = array<i32>} : memref<2x8x128xf32, #tpu.memory_space<vmem>>, vector<2x8x128xf32>,
    } else {
    }
    %c0 = arith.constant 0 : index
    %c0_1 = arith.constant 0 : index
    %c0_2 = arith.constant 0 : index
    %3 = vector.load %arg9[%c0, %c0_1, %c0_2] : memref<2x8x128xf32, #tpu.memory_space<vmem>>, vector<1x8x128xf32>
    %4 = vector.shape_cast %3 : vector<1x8x128xf32> to vector<8x128xf32>
    %c0_3 = arith.constant 0 : index
    %c0_4 = arith.constant 0 : index
    %c0_5 = arith.constant 0 : index
    %5 = vector.load %arg2[%c0_3, %c0_4, %c0_5] : memref<1x8x128xbf16, #tpu.memory_space<vmem>>, vector<1x8x128xbf16>
    %6 = vector.shape_cast %5 : vector<1x8x128xbf16> to vector<8x128xbf16>
    %7 = arith.extf %6 : vector<8x128xbf16> to vector<8x128xf32>
    %8 = arith.truncf %4 : vector<8x128xf32> to vector<8x128xbf16>
    %c0_6 = arith.constant 0 : index
    %c0_7 = arith.constant 0 : index
    %9 = vector.load %arg3[%c0_6, %c0_7] : memref<128x128xbf16, #tpu.memory_space<vmem>>, vector<128x128xbf16>
    %cst = arith.constant dense<0.000000e+00> : vector<8x128xf32>
    %10 = tpu.matmul %8, %9, %cst {dimension_numbers = #tpu.dot_dimension_numbers<[1], [0], [0], [1], [0, 0, 1, 1], [], []>} : vector<8x128xbf16>, vector<128x128xbf16>, vector<8x128xf32> -> vector<8x128xf32>
    %11 = arith.addf %7, %10 : vector<8x128xf32>
    %cst_8 = arith.constant 0.000000e+00 : f32
    %12 = vector.broadcast %cst_8 : f32 to vector<8x128xf32>
    %13 = arith.maximumf %11, %12 : vector<8x128xf32>
    %c0_9 = arith.constant 0 : index
    %c0_10 = arith.constant 0 : index
    %c0_11 = arith.constant 0 : index
    %14 = vector.load %arg9[%c0_9, %c0_10, %c0_11] : memref<2x8x128xf32, #tpu.memory_space<vmem>>, vector<1x8x128xf32>
    %15 = vector.shape_cast %14 : vector<1x8x128xf32> to vector<8x128xf32>
    %16 = vector.shape_cast %13 : vector<8x128xf32> to vector<1x8x128xf32>
    tpu.vector_store %arg9[%c0_9, %c0_10, %c0_11], %16 {strides = array<i32>} : memref<2x8x128xf32, #tpu.memory_space<vmem>>, vector<1x8x128xf32>,
    %c1 = arith.constant 1 : index
    %c0_12 = arith.constant 0 : index
    %c0_13 = arith.constant 0 : index
    %17 = vector.load %arg9[%c1, %c0_12, %c0_13] : memref<2x8x128xf32, #tpu.memory_space<vmem>>, vector<1x8x128xf32>
    %18 = vector.shape_cast %17 : vector<1x8x128xf32> to vector<8x128xf32>
    %19 = arith.truncf %13 : vector<8x128xf32> to vector<8x128xbf16>
    %20 = arith.truncf %18 : vector<8x128xf32> to vector<8x128xbf16>
    %21 = tpu.concatenate %19, %20 in 1 : vector<8x128xbf16>, vector<8x128xbf16> -> vector<8x256xbf16>
    %c0_14 = arith.constant 0 : index
    %c0_15 = arith.constant 0 : index
    %c0_16 = arith.constant 0 : index
    %22 = vector.load %arg4[%c0_14, %c0_15, %c0_16] : memref<1x256x128xbf16, #tpu.memory_space<vmem>>, vector<1x256x128xbf16>
    %23 = vector.shape_cast %22 : vector<1x256x128xbf16> to vector<256x128xbf16>
    %cst_17 = arith.constant dense<0.000000e+00> : vector<8x128xf32>
    %24 = tpu.matmul %21, %23, %cst_17 {dimension_numbers = #tpu.dot_dimension_numbers<[1], [0], [0], [1], [0, 0, 1, 1], [], []>} : vector<8x256xbf16>, vector<256x128xbf16>, vector<8x128xf32> -> vector<8x128xf32>
    %c0_18 = arith.constant 0 : index
    %c0_19 = arith.constant 0 : index
    %c0_20 = arith.constant 0 : index
    %25 = vector.load %arg5[%c0_18, %c0_19, %c0_20] : memref<1x1x128xf32, #tpu.memory_space<vmem>>, vector<1x1x128xf32>
    %26 = vector.shape_cast %25 : vector<1x1x128xf32> to vector<1x128xf32>
    %27 = vector.broadcast %26 : vector<1x128xf32> to vector<8x128xf32>
    %28 = arith.addf %24, %27 : vector<8x128xf32>
    %cst_21 = arith.constant 0.000000e+00 : f32
    %29 = vector.broadcast %cst_21 : f32 to vector<8x128xf32>
    %30 = arith.maximumf %28, %29 : vector<8x128xf32>
    %c1_22 = arith.constant 1 : index
    %c0_23 = arith.constant 0 : index
    %c0_24 = arith.constant 0 : index
    %31 = vector.load %arg9[%c1_22, %c0_23, %c0_24] : memref<2x8x128xf32, #tpu.memory_space<vmem>>, vector<1x8x128xf32>
    %32 = vector.shape_cast %31 : vector<1x8x128xf32> to vector<8x128xf32>
    %33 = vector.shape_cast %30 : vector<8x128xf32> to vector<1x8x128xf32>
    tpu.vector_store %arg9[%c1_22, %c0_23, %c0_24], %33 {strides = array<i32>} : memref<2x8x128xf32, #tpu.memory_space<vmem>>, vector<1x8x128xf32>,
    %c7_i32 = arith.constant 7 : i32
    %34 = arith.cmpi eq, %arg1, %c7_i32 : i32
    %35 = arith.extui %34 : i1 to i32
    %c0_i32_25 = arith.constant 0 : i32
    %36 = arith.cmpi ne, %35, %c0_i32_25 : i32
    scf.if %36 {
      %37 = arith.truncf %30 : vector<8x128xf32> to vector<8x128xbf16>
      %c0_26 = arith.constant 0 : index
      %c0_27 = arith.constant 0 : index
      %38 = vector.load %arg6[%c0_26, %c0_27] : memref<128x128xbf16, #tpu.memory_space<vmem>>, vector<128x128xbf16>
      %cst_28 = arith.constant dense<0.000000e+00> : vector<8x128xf32>
      %39 = tpu.matmul %37, %38, %cst_28 {dimension_numbers = #tpu.dot_dimension_numbers<[1], [0], [0], [1], [0, 0, 1, 1], [], []>} : vector<8x128xbf16>, vector<128x128xbf16>, vector<8x128xf32> -> vector<8x128xf32>
      %c0_29 = arith.constant 0 : index
      %c0_30 = arith.constant 0 : index
      %40 = vector.load %arg7[%c0_29, %c0_30] : memref<1x128xf32, #tpu.memory_space<vmem>>, vector<1x128xf32>
      %41 = vector.broadcast %40 : vector<1x128xf32> to vector<8x128xf32>
      %42 = arith.addf %39, %41 : vector<8x128xf32>
      %c0_31 = arith.constant 0 : index
      %c0_32 = arith.constant 0 : index
      %43 = vector.load %arg8[%c0_31, %c0_32] : memref<8x128xf32, #tpu.memory_space<vmem>>, vector<8x128xf32>
      tpu.vector_store %arg8[%c0_31, %c0_32], %42 {strides = array<i32>} : memref<8x128xf32, #tpu.memory_space<vmem>>, vector<8x128xf32>,
    } else {
    }
    return
  }
  func.func @transform_0(%arg0: i32, %arg1: i32) -> (i32, i32, i32) {
    %c0_i32 = arith.constant 0 : i32
    %c0_i32_0 = arith.constant 0 : i32
    return %arg1, %arg0, %c0_i32 : i32, i32, i32
  }
  func.func @transform_1(%arg0: i32, %arg1: i32) -> (i32, i32) {
    %c0_i32 = arith.constant 0 : i32
    %c0_i32_0 = arith.constant 0 : i32
    %c0_i32_1 = arith.constant 0 : i32
    return %c0_i32, %c0_i32_0 : i32, i32
  }
  func.func @transform_2(%arg0: i32, %arg1: i32) -> (i32, i32, i32) {
    %c0_i32 = arith.constant 0 : i32
    %c0_i32_0 = arith.constant 0 : i32
    %c0_i32_1 = arith.constant 0 : i32
    %c0_i32_2 = arith.constant 0 : i32
    return %c0_i32, %c0_i32_0, %c0_i32_1 : i32, i32, i32
  }
  func.func @transform_3(%arg0: i32, %arg1: i32) -> (i32, i32, i32) {
    %c0_i32 = arith.constant 0 : i32
    %c0_i32_0 = arith.constant 0 : i32
    %c0_i32_1 = arith.constant 0 : i32
    %c0_i32_2 = arith.constant 0 : i32
    return %c0_i32, %c0_i32_0, %c0_i32_1 : i32, i32, i32
  }
  func.func @transform_4(%arg0: i32, %arg1: i32) -> (i32, i32) {
    %c0_i32 = arith.constant 0 : i32
    %c0_i32_0 = arith.constant 0 : i32
    %c0_i32_1 = arith.constant 0 : i32
    return %c0_i32, %c0_i32_0 : i32, i32
  }
  func.func @transform_5(%arg0: i32, %arg1: i32) -> (i32, i32) {
    %c0_i32 = arith.constant 0 : i32
    %c0_i32_0 = arith.constant 0 : i32
    %c0_i32_1 = arith.constant 0 : i32
    return %c0_i32, %c0_i32_0 : i32, i32
  }
  func.func @transform_6(%arg0: i32, %arg1: i32) -> (i32, i32) {
    %c0_i32 = arith.constant 0 : i32
    %c0_i32_0 = arith.constant 0 : i32
    return %arg0, %c0_i32 : i32, i32
  }
}

</mosaic_0001>

<bundles_post_ra>
// kernel: tpu_custom_call.1
= control target key start
LH: loop header
LB: loop body
LE: loop exit
PB: predicated region body
PF: predicated region fallthrough
CT: control target
= control target key end

     0   :  { %11 = vsyncpa [#allocation4], 0  ;;  %s1450_s0 = inlined_call_operand.hbm [shape: bf16[8,8,128], index: 0, kind: input, shape index: {}]   ;;  %s1451_s1 = inlined_call_operand.hbm [shape: bf16[128,128], index: 1, kind: input, shape index: {}]   ;;  %s1452_s2 = inlined_call_operand.hbm [shape: bf16[1,256,128], index: 2, kind: input, shape index: {}]   ;;  %s1453_s3 = inlined_call_operand.vmem [shape: f32[1,1,128], index: 3, kind: input, shape index: {}]   ;;  %s1454_s4 = inlined_call_operand.hbm [shape: bf16[128,128], index: 4, kind: input, shape index: {}]   ;;  %s1455_s5 = inlined_call_operand.vmem [shape: f32[1,128], index: 5, kind: input, shape index: {}]   ;;  %s1456_s6 = inlined_call_operand.hbm [shape: f32[8,128], index: 6, kind: output, shape index: {}]  }
   0x1   :  { %13 = vsyncpa [#allocation4 + $0x1], 0 }
   0x2   :  { %14 = vsyncpa [#allocation7], 0 }
   0x3   :  { %15 = vsyncpa [#allocation10], 0 }
   0x4   :  { %16 = vsyncpa [#allocation5], 0  ;;  %s1301_s21 = smov 0   ;;  %s1303_s22 = smov 0  }
   0x5   :  { %s1305_s23 = smov 0   ;;  %s1307_s24 = smov 0  }
   0x6   :  { %s1309_s25 = smov 0   ;;  %s1311_s26 = smov 0  }
   0x7 LB: > { %s770_s27 = sadd.s32 4294967295, %s1257_s26   ;;  %p771_p0 = scmp.ge.s32.totalorder %s1257_s26, 1  ;;  %s1257_s26 = sphi %s1311_s26, %s22_s26   ;;  %s1253_s25 = sphi %s1309_s25, %s1466_s25   ;;  %s1249_s24 = sphi %s1307_s24, %s1465_s24   ;;  %s1245_s23 = sphi %s1305_s23, %s1464_s23   ;;  %s1241_s22 = sphi %s1303_s22, %s1463_s22   ;;  %s1237_s21 = sphi %s1301_s21, %s1462_s21  }
   0x8   : > { %p1335_p1 = scmp.eq.s32.totalorder %s770_s27, 0  ;;  %p198_p2 = scmp.lt.s32.totalorder %s1257_s26, 9 }
   0x9   : > { %s209_s7 = sshll.u32 %s1451_s1, 4  ;;  %s1259_s9 = smov [#allocation6]   ;;  %s210_s7 = int_to_ptr.hbm [resolvable:$true] %s209_s7 }
   0xa   : > { %p1343_p3 = pnand %p771_p0, %p198_p2  ;;  %s211_s10 = sshll.u32 %s1259_s9, 4  ;;  %s212_s10 = int_to_ptr.vmem [resolvable:$true] %s211_s10 }
   0xb   : > { %s223_s14 = sshll.u32 %s1452_s2, 4  ;;  %s1260_s15 = smov 64   ;;  %s224_s14 = int_to_ptr.hbm [resolvable:$true] %s223_s14 }
   0xc   : > { %p967_p4 = pneg %p1343_p3  ;;  %s1261_s16 = smov 4  }
   0xd   : > { %s1262_s17 = smov [#allocation8]   ;;  %s240_s29 = sshll.u32 %s1454_s4, 4  ;;  %s241_s29 = int_to_ptr.hbm [resolvable:$true] %s240_s29 }
   0xe   : > { %p1351_p5 = pnand %p967_p4, %p1335_p1  ;;  %s225_s18 = sshll.u32 %s1262_s17, 4  ;;  %s226_s18 = int_to_ptr.vmem [resolvable:$true] %s225_s18 }
   0xf   : > { %s1263_s30 = smov [#allocation9]   ;;  %p50_p7 = scmp.ne.s32.totalorder %s1245_s23, %s1241_s22 }
  0x10   : > { %970 = dma.hbm_to_vmem [thread:$0]  (!%p1351_p5), %s210_s7, 1024, %s212_s10, [#allocation7], %s1260_s15, %s1260_s15, %s1261_s16  }
  0x11   : > { %973 = dma.hbm_to_vmem [thread:$0]  (!%p1351_p5), %s224_s14, 2048, %s226_s18, [#allocation7], %s1260_s15, %s1260_s15, %s1261_s16  }
  0x12   : > { %s242_s9 = sshll.u32 %s1263_s30, 4  ;;  %s31_s7 = sadd.s32 1, %s1253_s25  ;;  %s243_s9 = int_to_ptr.vmem [resolvable:$true] %s242_s9 }
  0x13   : > { %976 = dma.hbm_to_vmem [thread:$0]  (!%p1351_p5), %s241_s29, 1024, %s243_s9, [#allocation10], %s1260_s15, %s1260_s15, %s1261_s16  }
  0x14   : > { %p32_p6 = scmp.ge.s32.totalorder %s31_s7, 8  ;;  %p51_p8 = scmp.eq.s32.totalorder %s1257_s26, 0 }
  0x15   : > { %s43_s10 = sadd.s32 1, %s1245_s23  ;;  %p56_p9 = scmp.ne.s32.totalorder %s1241_s22, %s1237_s21 }
  0x16   : > { %s1468_s7 = smov (%p32_p6, %s31_s7), 0  ;;  %p1378_p10 = por %p51_p8, %p50_p7 }
  0x17   : > { %s38_s12 = ssub.s32 %s1253_s25, %s1468_s7  ;;  %p1384_p12 = por %p1335_p1, %p56_p9 }
  0x18   : > { %p41_p11 = scmp.eq.s32.totalorder %s38_s12, 0  ;;  %s259_s14 = sand.u32 1, %s1245_s23  }
  0x19   : > { %s777_s15 = sshll.u32 %s1253_s25, 2  ;;  %p984_p13 = scmp.lt.s32.totalorder %s1257_s26, 8 }
  0x1a   : > { %s1391_s16 = scalar_select %p41_p11, %s1245_s23, %s43_s10  }
  0x1b   : > { %s776_s17 = sshll.u32 %s259_s14, 2  ;;  %s268_s19 = scalar_lea.hbm %s1450_s0, %s777_s15 }
  0x1c   : > { %s270_s20 = sshll.u32 %s268_s19, 4  ;;  %s263_s29 = scalar_lea.vmem [#allocation3], %s776_s17  ;;  %s271_s20 = int_to_ptr.hbm [resolvable:$true] %s270_s20 }
  0x1d   : > { %s272_s30 = sshll.u32 %s263_s29, 4  ;;  %p978_p0 = pnand %p984_p13, %p1378_p10  ;;  %s273_s30 = int_to_ptr.vmem [resolvable:$true] %s272_s30 }
  0x1e   : > { %s260_s9 = scalar_lea.sflag [#allocation4], %s259_s14  ;;  %281 = sbr.rel (%p1343_p3) target bundleno = 520 (0x208), region = 44 }
  0x1f   : > { %980 = dma.hbm_to_vmem [thread:$0]  (!%p978_p0), %s271_s20, 64, %s273_s30, %s260_s9  }
  0x20   : > { %s283_s10 = sand.u32 (!%p1343_p3), 1, %s1241_s22  }
  0x21   : > { %s1402_s12 = sshll.u32 (!%p1343_p3), %s283_s10, 2  ;;  %s284_s18 = scalar_lea.sflag (!%p1343_p3), [#allocation4], %s283_s10 }
  0x22   : > { %s287_s15 = scalar_lea.vmem (!%p1343_p3), [#allocation3], %s1402_s12 }
  0x23   : > { %1220 = dma.done.wait (%p1384_p12), %s284_s18, 64  }
  0x24   : > { %1222 = vsyncadd (%p1384_p12), %s284_s18, 4294967232 }
  0x25   : > { %1224 = dma.done.wait (%p1335_p1), [#allocation7], 3072  }
  0x26   : > { %1226 = vsyncadd (%p1335_p1), [#allocation7], 4294964224 }
  0x27   : > { %1228 = dma.done.wait (%p1335_p1), [#allocation10], 1024  }
  0x28   : > { %1230 = vsyncadd (%p1335_p1), [#allocation10], 4294966272  ;;  %p783_p2 = scmp.ne.s32.totalorder %s1249_s24, 0 }
  0x2a   : > { %330 = sbr.rel (%p783_p2) target bundleno = 50 (0x32), region = 64 }
  0x2f   : > { %v1264_v0 = vmov 0.0  }
  0x30   : > { %331 = vst [vmem:[#allocation2] sm:$0xff] %v1264_v0 }
  0x31   : > { %332 = vst [vmem:[#allocation2 + $0x8] sm:$0xff] %v1264_v0 }
  0x32 PF: > { %v924_v1 = vld [vmem:[#allocation6 + $0x38] sm:$0xff]  ;;  %v923_v2 = vld [vmem:[#allocation6 + $0x30] sm:$0xff]  ;;  %v922_v6 = vld [vmem:[#allocation6 + $0x28] sm:$0xff]  ;;  %p880_p1 = scmp.ne.s32.totalorder %s1249_s24, 7 }
  0x33   : > { %401 = vmatpush.bf16.msra.mxu0 %v924_v1  ;;  %v940_v3 = vld [vmem:[#allocation8 + $0x78] sm:$0xff]  ;;  %v939_v5 = vld [vmem:[#allocation8 + $0x70] sm:$0xff]  ;;  %v938_v8 = vld [vmem:[#allocation8 + $0x68] sm:$0xff] }
  0x34   : > { %v932_v4 = vld [vmem:[#allocation8 + $0x38] sm:$0xff]  ;;  %566 = vmatpush.bf16.msra.mxu2 %v940_v3  ;;  %v931_v7 = vld [vmem:[#allocation8 + $0x30] sm:$0xff]  ;;  %v921_v9 = vld [vmem:[#allocation6 + $0x20] sm:$0xff] }
  0x35   : > { %553 = vmatpush.bf16.msra.mxu1 %v932_v4  ;;  %v930_v10 = vld [vmem:[#allocation8 + $0x28] sm:$0xff]  ;;  %v937_v11 = vld [vmem:[#allocation8 + $0x60] sm:$0xff]  ;;  %v920_v12 = vld [vmem:[#allocation6 + $0x18] sm:$0xff] }
  0x36   : > { %v929_v13 = vld [vmem:[#allocation8 + $0x20] sm:$0xff]  ;;  %v936_v14 = vld [vmem:[#allocation8 + $0x58] sm:$0xff]  ;;  %v919_v15 = vld [vmem:[#allocation6 + $0x10] sm:$0xff] }
  0x37   : > { %402 = vmatpush.bf16.msra.mxu0 %v923_v2  ;;  %v928_v16 = vld [vmem:[#allocation8 + $0x18] sm:$0xff]  ;;  %v935_v17 = vld [vmem:[#allocation8 + $0x50] sm:$0xff]  ;;  %v918_v18 = vld [vmem:[#allocation6 + $0x8] sm:$0xff] }
  0x38   : > { %567 = vmatpush.bf16.msra.mxu2 %v939_v5  ;;  %v927_v19 = vld [vmem:[#allocation8 + $0x10] sm:$0xff]  ;;  %v934_v20 = vld [vmem:[#allocation8 + $0x48] sm:$0xff]  ;;  %v917_v21 = vld [vmem:[#allocation6] sm:$0xff] }
  0x39   : > { %554 = vmatpush.bf16.msra.mxu1 %v931_v7  ;;  %v333_v22 = vld [vmem:[#allocation2] sm:$0xff]  ;;  %v933_v24 = vld [vmem:[#allocation8 + $0x40] sm:$0xff]  ;;  %v418_v25 = vld [vmem:[#allocation2 + $0x8] sm:$0xff] }
  0x3a   : > { %v336_v23 = vpack.c.bf16 %v333_v22, %v333_v22  ;;  %v420_v26 = vpack.c.bf16 %v418_v25, %v418_v25  ;;  %v926_v27 = vld [vmem:[#allocation8 + $0x8] sm:$0xff]  ;;  %v925_v28 = vld [vmem:[#allocation8] sm:$0xff]  ;;  %v334_v29 = vld [vmem:[%s287_s15] sm:$0xf] }
  0x3b   : > { %403 = vmatpush.bf16.msra.mxu0 %v922_v6  ;;  %v335_v30 = vunpack.c.l.bf16 %v334_v29  ;;  %v1045_v38 = vld [vmem:[%s1453_s3] ss:$0 sm:$0xff] }
  0x3c   : > { %568 = vmatpush.bf16.msra.mxu2 %v938_v8 }
  0x3d   : > { %555 = vmatpush.bf16.msra.mxu1 %v930_v10 }
  0x3f   : > { %404 = vmatpush.bf16.msra.mxu0 %v921_v9 }
  0x40   : > { %569 = vmatpush.bf16.msra.mxu2 %v937_v11 }
  0x41   : > { %556 = vmatpush.bf16.msra.mxu1 %v929_v13 }
  0x43   : > { %405 = vmatpush.bf16.msra.mxu0 %v920_v12 }
  0x44   : > { %570 = vmatpush.bf16.msra.mxu2 %v936_v14 }
  0x45   : > { %557 = vmatpush.bf16.msra.mxu1 %v928_v16 }
  0x47   : > { %406 = vmatpush.bf16.msra.mxu0 %v919_v15 }
  0x48   : > { %571 = vmatpush.bf16.msra.mxu2 %v935_v17 }
  0x49   : > { %558 = vmatpush.bf16.msra.mxu1 %v927_v19 }
  0x4b   : > { %407 = vmatpush.bf16.msra.mxu0 %v918_v18 }
  0x4c   : > { %572 = vmatpush.bf16.msra.mxu2 %v934_v20 }
  0x4d   : > { %559 = vmatpush.bf16.msra.mxu1 %v926_v27 }
  0x4f   : > { %408 = vmatpush.bf16.msra.mxu0 %v917_v21 }
  0x50   : > { %573 = vmatpush.bf16.msra.mxu2 %v933_v24 }
  0x51   : > { %560 = vmatpush.bf16.msra.mxu1 %v925_v28 }
  0x52   : > { %409 = vmatmul.bf16.vlgmr.msra.gmra.mxu0 %v336_v23 }
  0x53   : > { %574 = vmatmul.bf16.vlgmr.msra.gmra.mxu2 %v420_v26 }
  0xcf   : > { %v410_v31 = vpop.f32.mrf.mxu0 }
  0xd0   : > { %v414_v32 = vadd.f32 %v410_v31, %v335_v30 }
  0xd2   : > { %v415_v33 = vmax.f32 %v414_v32, 0.0 }
  0xd4   : > { %416 = vst [vmem:[#allocation2] sm:$0xff] %v415_v33  ;;  %v419_v34 = vpack.c.bf16 %v415_v33, %v415_v33 }
  0xd6   : > { %561 = vmatmul.bf16.vlgmr.msra.gmra.mxu1 %v419_v34  ;;  %v575_v36 = vpop.f32.mrf.mxu2 }
  0xd7   : > { %v412_v35 = vpop.f32.mrf.mxu0 }
  0xde   : > { %v577_v37 = vpop.f32.mrf.mxu2 }
 0x153   : > { %v562_v39 = vpop.f32.mrf.mxu1 }
 0x154   : > { %v563_v40 = vadd.f32 %v1045_v38, %v562_v39 }
 0x156   : > { %v576_v41 = vadd.f32 %v575_v36, %v563_v40 }
 0x157   : > { %584 = sbr.rel (%p880_p1) target bundleno = 514 (0x202), region = 68 }
 0x158   : > { %v579_v42 = vmax.f32 %v576_v41, 0.0 }
 0x15a   : > { %580 = vst [vmem:[#allocation2 + $0x8] sm:$0xff] %v579_v42 }
 0x15b   : > { %v564_v43 = vpop.f32.mrf.mxu1 }
 0x15c   : > { %v948_v44 = vld [vmem:[#allocation9 + $0x38] sm:$0xff]  ;;  %v947_v45 = vld [vmem:[#allocation9 + $0x30] sm:$0xff]  ;;  %v946_v46 = vld [vmem:[#allocation9 + $0x28] sm:$0xff]  ;;  %v585_v52 = vpack.c.bf16 %v579_v42, %v579_v42 }
 0x15d   : > { %654 = vmatpush.bf16.msra.mxu0 %v948_v44  ;;  %v945_v47 = vld [vmem:[#allocation9 + $0x20] sm:$0xff]  ;;  %v944_v48 = vld [vmem:[#allocation9 + $0x18] sm:$0xff]  ;;  %v943_v49 = vld [vmem:[#allocation9 + $0x10] sm:$0xff] }
 0x15e   : > { %v942_v50 = vld [vmem:[#allocation9 + $0x8] sm:$0xff]  ;;  %v941_v51 = vld [vmem:[#allocation9] sm:$0xff] }
 0x15f   : > { %v1046_v53 = vld [vmem:[%s1455_s5] ss:$0 sm:$0xff] }
 0x161   : > { %655 = vmatpush.bf16.msra.mxu0 %v947_v45 }
 0x165   : > { %656 = vmatpush.bf16.msra.mxu0 %v946_v46 }
 0x169   : > { %657 = vmatpush.bf16.msra.mxu0 %v945_v47 }
 0x16d   : > { %658 = vmatpush.bf16.msra.mxu0 %v944_v48 }
 0x171   : > { %659 = vmatpush.bf16.msra.mxu0 %v943_v49 }
 0x175   : > { %660 = vmatpush.bf16.msra.mxu0 %v942_v50 }
 0x179   : > { %661 = vmatpush.bf16.msra.mxu0 %v941_v51 }
 0x17c   : > { %662 = vmatmul.bf16.vlgmr.msra.gmra.mxu0 %v585_v52 }
 0x1f9   : > { %v663_v54 = vpop.f32.mrf.mxu0 }
 0x1fa   : > { %v664_v55 = vadd.f32 %v1046_v53, %v663_v54 }
 0x1fc   : > { %667 = vst [vmem:[#allocation11] sm:$0xff] %v664_v55 }
 0x201   : > { %v665_v56 = vpop.f32.mrf.mxu0 }
 0x202 PF: > { %p988_p3 = scmp.eq.s32.totalorder %s770_s27, 7  ;;  %s678_s17 = sshll.u32 %s1456_s6, 4  ;;  %s679_s17 = int_to_ptr.hbm [resolvable:$true] %s678_s17 }
 0x203   : > { %s1265_s21 = smov [#allocation11]  }
 0x204   : > { %s676_s19 = sshll.u32 %s1265_s21, 4  ;;  %s677_s19 = int_to_ptr.vmem [resolvable:$true] %s676_s19 }
 0x205   : > { %964 = dma.vmem_to_hbm [thread:$0]  (%p988_p3), %s677_s19, 128, %s679_s17, [#allocation5]  }
 0x206   : > { %1232 = dma.done.wait (%p988_p3), [#allocation5], 128  }
 0x207   : > { %1234 = vsyncadd (%p988_p3), [#allocation5], 4294967168 }
 0x208 PF: > { %s22_s26 = sadd.s32 1, %s1257_s26   ;;  %s1462_s21 = smov %s1241_s22 }
 0x209   : > { %p19_p4 = scmp.ge.s32.totalorder %s22_s26, 10   ;;  %s1463_s22 = smov %s1245_s23 }
 0x20a   : > { %s1464_s23 = smov %s1391_s16  ;;  %s1465_s24 = smov %s1253_s25 }
 0x20b   : > { %s1466_s25 = smov %s1468_s7  ;;  %21 = sbr.rel (!%p19_p4) target bundleno = 7 (0x7), region = 103 }
 0x210   :  { %692 = vsyncpa [#allocation4], 1 }
 0x211   :  { %694 = vsyncpa [#allocation4 + $0x1], 1 }
 0x212   :  { %695 = vsyncpa [#allocation7], 1 }
 0x213   :  { %696 = vsyncpa [#allocation10], 1 }
 0x214   :  { %697 = vsyncpa [#allocation5], 1 }
 0x215   :  { %699 = vsyncpa [#allocation5 + $0x1], 1 }

</bundles_post_ra>
